<compile_context>
chip_gen: v7x
topology: tpu7x:2x2x1
jax: 0.10.0
libtpu: 0.0.40
codegen_flags: <defaults>
</compile_context>

<pallas_src>
import jax
import jax.numpy as jnp
from jax.experimental import pallas as pl
from jax.experimental.pallas import tpu as pltpu


def mlp_kernel(x_ref, w1_ref, b1_ref, w2_ref, b2_ref, w3_ref, b3_ref, o_ref):
    x = x_ref[...]        # (3, tm)   batch on lanes
    w1 = w1_ref[...]      # (128, 3)

    # Layer 1 on the VPU: h1 = W1 @ x as 3 broadcast FMAs (avoids a K=3 MXU
    # matmul and its push/pop latency on the serial dot chain).
    h1 = (w1[:, 0:1] * x[0:1, :]
          + w1[:, 1:2] * x[1:2, :]
          + w1[:, 2:3] * x[2:3, :]
          + b1_ref[...])                       # (128, tm)
    h1 = jnp.maximum(h1, 0.0)
    # Dropout(0.2) -> identity in eval mode

    # Layer 2: (64,128) @ (128,tm) on the MXU, f32 accumulate.
    h2 = jnp.dot(w2_ref[...], h1, preferred_element_type=jnp.float32) + b2_ref[...]
    h2 = jnp.maximum(h2, 0.0)                  # (64, tm)
    # Dropout(0.2) -> identity in eval mode

    # Layer 3: (2,64) @ (64,tm) -> (2,tm); lane-dense unmasked stores.
    o_ref[...] = (jnp.dot(w3_ref[...], h2, preferred_element_type=jnp.float32)
                  + b3_ref[...]).astype(o_ref.dtype)


def vector_field_model(x, params, *, tm=None):
    """x: (N, 3) float32. Returns (N, 2) float32."""
    w1, b1, w2, b2, w3, b3 = params
    N = x.shape[0]

    if tm is None:
        # Small batches: single grid step with the whole batch in one block.
        # Large batches: big tiles to amortize the ~0.35us/step overhead while
        # keeping the grid long enough to shard across v7x's two TensorCores.
        tm = N if N <= 2048 else 2048
    assert N % tm == 0, "pad batch to a multiple of tm"
    assert tm == N or tm % 128 == 0, "tile must be lane-aligned (multiple of 128)"

    x_t = x.T  # (3, N): batch on the lane axis -> lane-dense input DMA

    weight_bytes = sum(int(a.size) * a.dtype.itemsize for a in params)
    cost = pl.CostEstimate(
        flops=2 * N * (3 * 128 + 128 * 64 + 64 * 2),
        transcendentals=0,
        bytes_accessed=N * (3 + 2) * 4 + weight_bytes,
    )

    # Grid-invariant index_maps: weights/biases are DMAed once, never re-fetched.
    full = lambda arr: pl.BlockSpec(arr.shape, lambda i: (0, 0))

    out_t = pl.pallas_call(
        mlp_kernel,
        out_shape=jax.ShapeDtypeStruct((2, N), jnp.float32),
        grid_spec=pltpu.PrefetchScalarGridSpec(
            num_scalar_prefetch=0,
            grid=(N // tm,),
            in_specs=[
                pl.BlockSpec((3, tm), lambda i: (0, i)),   # x tile (batch on lanes)
                full(w1), full(b1),
                full(w2), full(b2),
                full(w3), full(b3),
            ],
            out_specs=pl.BlockSpec((2, tm), lambda i: (0, i)),
        ),
        compiler_params=pltpu.CompilerParams(
            dimension_semantics=("parallel",)),
        cost_estimate=cost,
    )(x_t, w1, b1, w2, b2, w3, b3)

    return out_t.T  # (N, 2)


def init_params(key):
    """Deterministic init matching nn.Linear: weights (out, in), biases (out, 1)."""
    ks = jax.random.split(key, 6)

    def linear(kw, kb, fan_in, fan_out):
        bound = 1.0 / jnp.sqrt(float(fan_in))
        w = jax.random.uniform(kw, (fan_out, fan_in), jnp.float32, -bound, bound)
        b = jax.random.uniform(kb, (fan_out, 1), jnp.float32, -bound, bound)
        return w, b

    w1, b1 = linear(ks[0], ks[1], 3, 128)
    w2, b2 = linear(ks[2], ks[3], 128, 64)
    w3, b3 = linear(ks[4], ks[5], 64, 2)
    return (w1, b1, w2, b2, w3, b3)


def reference(x, params):
    w1, b1, w2, b2, w3, b3 = params
    h1 = jnp.maximum(x @ w1.T + b1.T, 0.0)
    h2 = jnp.maximum(h1 @ w2.T + b2.T, 0.0)
    return h2 @ w3.T + b3.T


if __name__ == "__main__":
    key = jax.random.PRNGKey(0)
    k_x, k_p = jax.random.split(key)
    params = init_params(k_p)

    # Small batch: whole batch in one block (grid=(1,)).
    N = 256
    x = jax.random.normal(k_x, (N, 3), dtype=jnp.float32)
    out = jax.block_until_ready(vector_field_model(x, params))
    ref = reference(x, params)
    assert out.shape == (N, 2)
    assert jnp.allclose(out, ref, atol=1e-5, rtol=1e-5), "mismatch vs reference (grid=1)"

    # Multi-step grid sanity check (tm < N exercises the tiled index_maps).
    N2 = 512
    x2 = jax.random.normal(k_x, (N2, 3), dtype=jnp.float32)
    out2 = jax.block_until_ready(vector_field_model(x2, params, tm=256))
    ref2 = reference(x2, params)
    assert jnp.allclose(out2, ref2, atol=1e-5, rtol=1e-5), "mismatch vs reference (grid=2)"

    print("KERNEL_OK")
</pallas_src>

<mosaic_0001>
module attributes {stable_mosaic.version = 11 : i64} {
  func.func @mlp_kernel(%arg0: i32, %arg1: memref<3x256xf32, #tpu.memory_space<vmem>>, %arg2: memref<128x3xf32, #tpu.memory_space<vmem>>, %arg3: memref<128x1xf32, #tpu.memory_space<vmem>>, %arg4: memref<64x128xf32, #tpu.memory_space<vmem>>, %arg5: memref<64x1xf32, #tpu.memory_space<vmem>>, %arg6: memref<2x64xf32, #tpu.memory_space<vmem>>, %arg7: memref<2x1xf32, #tpu.memory_space<vmem>>, %arg8: memref<2x256xf32, #tpu.memory_space<vmem>>) attributes {dimension_semantics = [#tpu.dimension_semantics<parallel>], iteration_bounds = array<i64: 1>, scalar_prefetch = 0 : i64, scratch_operands = 0 : i64, tpu.core_type = #tpu.core_type<tc>, window_params = [{transform_indices = @transform_0, window_bounds = array<i64: 3, 256>}, {pipeline_mode = #tpu.pipeline_mode<synchronous>, transform_indices = @transform_1, window_bounds = array<i64: 128, 3>}, {pipeline_mode = #tpu.pipeline_mode<synchronous>, transform_indices = @transform_2, window_bounds = array<i64: 128, 1>}, {pipeline_mode = #tpu.pipeline_mode<synchronous>, transform_indices = @transform_3, window_bounds = array<i64: 64, 128>}, {pipeline_mode = #tpu.pipeline_mode<synchronous>, transform_indices = @transform_4, window_bounds = array<i64: 64, 1>}, {pipeline_mode = #tpu.pipeline_mode<synchronous>, transform_indices = @transform_5, window_bounds = array<i64: 2, 64>}, {pipeline_mode = #tpu.pipeline_mode<synchronous>, transform_indices = @transform_6, window_bounds = array<i64: 2, 1>}, {transform_indices = @transform_7, window_bounds = array<i64: 2, 256>}]} {
    %c0 = arith.constant 0 : index
    %c0_0 = arith.constant 0 : index
    %0 = vector.load %arg1[%c0, %c0_0] : memref<3x256xf32, #tpu.memory_space<vmem>>, vector<3x256xf32>
    %c0_1 = arith.constant 0 : index
    %c0_2 = arith.constant 0 : index
    %1 = vector.load %arg2[%c0_1, %c0_2] : memref<128x3xf32, #tpu.memory_space<vmem>>, vector<128x3xf32>
    %2 = vector.extract_strided_slice %1 {offsets = [0, 0], sizes = [128, 1], strides = [1, 1]} : vector<128x3xf32> to vector<128x1xf32>
    %3 = vector.extract_strided_slice %0 {offsets = [0, 0], sizes = [1, 256], strides = [1, 1]} : vector<3x256xf32> to vector<1x256xf32>
    %4 = vector.broadcast %2 : vector<128x1xf32> to vector<128x256xf32>
    %5 = vector.broadcast %3 : vector<1x256xf32> to vector<128x256xf32>
    %6 = arith.mulf %4, %5 : vector<128x256xf32>
    %7 = vector.extract_strided_slice %1 {offsets = [0, 1], sizes = [128, 1], strides = [1, 1]} : vector<128x3xf32> to vector<128x1xf32>
    %8 = vector.extract_strided_slice %0 {offsets = [1, 0], sizes = [1, 256], strides = [1, 1]} : vector<3x256xf32> to vector<1x256xf32>
    %9 = vector.broadcast %7 : vector<128x1xf32> to vector<128x256xf32>
    %10 = vector.broadcast %8 : vector<1x256xf32> to vector<128x256xf32>
    %11 = arith.mulf %9, %10 : vector<128x256xf32>
    %12 = arith.addf %6, %11 : vector<128x256xf32>
    %13 = vector.extract_strided_slice %1 {offsets = [0, 2], sizes = [128, 1], strides = [1, 1]} : vector<128x3xf32> to vector<128x1xf32>
    %14 = vector.extract_strided_slice %0 {offsets = [2, 0], sizes = [1, 256], strides = [1, 1]} : vector<3x256xf32> to vector<1x256xf32>
    %15 = vector.broadcast %13 : vector<128x1xf32> to vector<128x256xf32>
    %16 = vector.broadcast %14 : vector<1x256xf32> to vector<128x256xf32>
    %17 = arith.mulf %15, %16 : vector<128x256xf32>
    %18 = arith.addf %12, %17 : vector<128x256xf32>
    %c0_3 = arith.constant 0 : index
    %c0_4 = arith.constant 0 : index
    %19 = vector.load %arg3[%c0_3, %c0_4] : memref<128x1xf32, #tpu.memory_space<vmem>>, vector<128x1xf32>
    %20 = vector.broadcast %19 : vector<128x1xf32> to vector<128x256xf32>
    %21 = arith.addf %18, %20 : vector<128x256xf32>
    %cst = arith.constant 0.000000e+00 : f32
    %22 = vector.broadcast %cst : f32 to vector<128x256xf32>
    %23 = arith.maximumf %21, %22 : vector<128x256xf32>
    %c0_5 = arith.constant 0 : index
    %c0_6 = arith.constant 0 : index
    %24 = vector.load %arg4[%c0_5, %c0_6] : memref<64x128xf32, #tpu.memory_space<vmem>>, vector<64x128xf32>
    %cst_7 = arith.constant dense<0.000000e+00> : vector<64x256xf32>
    %25 = tpu.matmul %24, %23, %cst_7 {dimension_numbers = #tpu.dot_dimension_numbers<[1], [0], [0], [1], [0, 0, 1, 1], [], []>} : vector<64x128xf32>, vector<128x256xf32>, vector<64x256xf32> -> vector<64x256xf32>
    %c0_8 = arith.constant 0 : index
    %c0_9 = arith.constant 0 : index
    %26 = vector.load %arg5[%c0_8, %c0_9] : memref<64x1xf32, #tpu.memory_space<vmem>>, vector<64x1xf32>
    %27 = vector.broadcast %26 : vector<64x1xf32> to vector<64x256xf32>
    %28 = arith.addf %25, %27 : vector<64x256xf32>
    %cst_10 = arith.constant 0.000000e+00 : f32
    %29 = vector.broadcast %cst_10 : f32 to vector<64x256xf32>
    %30 = arith.maximumf %28, %29 : vector<64x256xf32>
    %c0_11 = arith.constant 0 : index
    %c0_12 = arith.constant 0 : index
    %31 = vector.load %arg6[%c0_11, %c0_12] : memref<2x64xf32, #tpu.memory_space<vmem>>, vector<2x64xf32>
    %cst_13 = arith.constant dense<0.000000e+00> : vector<2x256xf32>
    %32 = tpu.matmul %31, %30, %cst_13 {dimension_numbers = #tpu.dot_dimension_numbers<[1], [0], [0], [1], [0, 0, 1, 1], [], []>} : vector<2x64xf32>, vector<64x256xf32>, vector<2x256xf32> -> vector<2x256xf32>
    %c0_14 = arith.constant 0 : index
    %c0_15 = arith.constant 0 : index
    %33 = vector.load %arg7[%c0_14, %c0_15] : memref<2x1xf32, #tpu.memory_space<vmem>>, vector<2x1xf32>
    %34 = vector.broadcast %33 : vector<2x1xf32> to vector<2x256xf32>
    %35 = arith.addf %32, %34 : vector<2x256xf32>
    %c0_16 = arith.constant 0 : index
    %c0_17 = arith.constant 0 : index
    %36 = vector.load %arg8[%c0_16, %c0_17] : memref<2x256xf32, #tpu.memory_space<vmem>>, vector<2x256xf32>
    tpu.vector_store %arg8[%c0_16, %c0_17], %35 {strides = array<i32>} : memref<2x256xf32, #tpu.memory_space<vmem>>, vector<2x256xf32>,
    return
  }
  func.func @transform_0(%arg0: i32) -> (i32, i32) {
    %c0_i32 = arith.constant 0 : i32
    %c0_i32_0 = arith.constant 0 : i32
    return %c0_i32, %arg0 : i32, i32
  }
  func.func @transform_1(%arg0: i32) -> (i32, i32) {
    %c0_i32 = arith.constant 0 : i32
    %c0_i32_0 = arith.constant 0 : i32
    %c0_i32_1 = arith.constant 0 : i32
    return %c0_i32, %c0_i32_0 : i32, i32
  }
  func.func @transform_2(%arg0: i32) -> (i32, i32) {
    %c0_i32 = arith.constant 0 : i32
    %c0_i32_0 = arith.constant 0 : i32
    %c0_i32_1 = arith.constant 0 : i32
    return %c0_i32, %c0_i32_0 : i32, i32
  }
  func.func @transform_3(%arg0: i32) -> (i32, i32) {
    %c0_i32 = arith.constant 0 : i32
    %c0_i32_0 = arith.constant 0 : i32
    %c0_i32_1 = arith.constant 0 : i32
    return %c0_i32, %c0_i32_0 : i32, i32
  }
  func.func @transform_4(%arg0: i32) -> (i32, i32) {
    %c0_i32 = arith.constant 0 : i32
    %c0_i32_0 = arith.constant 0 : i32
    %c0_i32_1 = arith.constant 0 : i32
    return %c0_i32, %c0_i32_0 : i32, i32
  }
  func.func @transform_5(%arg0: i32) -> (i32, i32) {
    %c0_i32 = arith.constant 0 : i32
    %c0_i32_0 = arith.constant 0 : i32
    %c0_i32_1 = arith.constant 0 : i32
    return %c0_i32, %c0_i32_0 : i32, i32
  }
  func.func @transform_6(%arg0: i32) -> (i32, i32) {
    %c0_i32 = arith.constant 0 : i32
    %c0_i32_0 = arith.constant 0 : i32
    %c0_i32_1 = arith.constant 0 : i32
    return %c0_i32, %c0_i32_0 : i32, i32
  }
  func.func @transform_7(%arg0: i32) -> (i32, i32) {
    %c0_i32 = arith.constant 0 : i32
    %c0_i32_0 = arith.constant 0 : i32
    return %c0_i32, %arg0 : i32, i32
  }
}

</mosaic_0001>

<bundles_post_ra>
// kernel: tpu_custom_call.1
= control target key start
LH: loop header
LB: loop body
LE: loop exit
PB: predicated region body
PF: predicated region fallthrough
CT: control target
= control target key end

     0   :  { %v1026_v1 = vmov 2   ;;  %v1027_v2 = vmov 1   ;;  %s1468_s0 = inlined_call_operand.vmem [shape: f32[3,256], index: 0, kind: input, shape index: {}]   ;;  %s1469_s1 = inlined_call_operand.vmem [shape: f32[128,3], index: 1, kind: input, shape index: {}]   ;;  %s1470_s2 = inlined_call_operand.vmem [shape: f32[128,1], index: 2, kind: input, shape index: {}]   ;;  %s1471_s3 = inlined_call_operand.vmem [shape: f32[64,128], index: 3, kind: input, shape index: {}]   ;;  %s1472_s4 = inlined_call_operand.vmem [shape: f32[64,1], index: 4, kind: input, shape index: {}]   ;;  %s1473_s5 = inlined_call_operand.vmem [shape: f32[2,64], index: 5, kind: input, shape index: {}]   ;;  %s1474_s6 = inlined_call_operand.vmem [shape: f32[2,1], index: 6, kind: input, shape index: {}]   ;;  %s1475_s7 = inlined_call_operand.hbm [shape: f32[2,256], index: 7, kind: output, shape index: {}]  }
   0x1   :  { %v28_v0 = vld [vmem:[%s1469_s1] sm:$0xff]  ;;  %976 = vset.pattern.permute.xlu0 %v1026_v1  ;;  %975 = vset.pattern.permute.xlu1 %v1027_v2  ;;  %v30_v3 = vld [vmem:[%s1469_s1 + $0x10] sm:$0xff]  ;;  %v29_v4 = vld [vmem:[%s1469_s1 + $0x8] sm:$0xff] }
   0x2   :  { %322 = vperm.xlu0 %976, %v28_v0   ;;  %176 = vperm.xlu1 %975, %v28_v0   ;;  %v33_v5 = vld [vmem:[%s1469_s1 + $0x28] sm:$0xff] }
   0x6   :  { %330 = vperm.xlu0 %976, %v30_v3   ;;  %180 = vperm.xlu1 %975, %v29_v4  }
   0xa   :  { %342 = vperm.xlu0 %976, %v33_v5   ;;  %977 = vset.pattern.permute.xlu1 %v1026_v1 }
   0xb   :  { %326 = vperm.xlu1 %977, %v29_v4  }
   0xc   :  { %12 = vsyncpa [#allocation3], 0  ;;  %v32_v6 = vld [vmem:[%s1469_s1 + $0x20] sm:$0xff]  ;;  %v1028_v7 = vmov 0   ;;  %v35_v8 = vld [vmem:[%s1469_s1 + $0x38] sm:$0xff]  ;;  %v125_v44 = vlaneseq  ;;  %vm819_vm0 = vcmask 523264  }
   0xd   :  { %v1098_v9 = vld [vmem:[%s1469_s1 + $0x48] sm:$0xff]  ;;  %v31_v10 = vld [vmem:[%s1469_s1 + $0x18] sm:$0xff]  ;;  %v467_v14 = vld [vmem:[%s1470_s2] sm:$0xff]  ;;  %s1030_s26 = smov [#allocation2]  }
   0xe   :  { %984 = vset.pattern.permute.xlu0 %v1027_v2  ;;  %v1107_v11 = vld [vmem:[%s1469_s1 + $0x58] sm:$0xff]  ;;  %v1113_v12 = vld [vmem:[%s1469_s1 + $0x68] sm:$0xff]  ;;  %v34_v16 = vld [vmem:[%s1469_s1 + $0x30] sm:$0xff]  ;;  %v126_v48 = vshrl.u32 %v125_v44, 7 }
   0xf   :  { %192 = vperm.xlu0 %984, %v32_v6   ;;  %978 = vset.pattern.permute.xlu1 %v1028_v7  ;;  %v1120_v13 = vld [vmem:[%s1469_s1 + $0x78] sm:$0xff]  ;;  %v468_v15 = vld [vmem:[%s1470_s2 + $0x8] sm:$0xff]  ;;  %v469_v17 = vld [vmem:[%s1470_s2 + $0x10] sm:$0xff] }
  0x10   :  { %56 = vperm.xlu1 %978, %v30_v3   ;;  %v471_v18 = vld [vmem:[%s1470_s2 + $0x20] sm:$0xff]  ;;  %v470_v19 = vld [vmem:[%s1470_s2 + $0x18] sm:$0xff]  ;;  %v473_v20 = vld [vmem:[%s1470_s2 + $0x30] sm:$0xff]  ;;  %v241_v52 = vsub.s32 1, %v126_v48  ;;  %v245_v53 = vsub.s32 5, %v126_v48  ;;  %v127_v56 = vsub.s32 0, %v126_v48 }
  0x11   :  { %v475_v21 = vld [vmem:[%s1470_s2 + $0x40] sm:$0xff]  ;;  %v477_v22 = vld [vmem:[%s1470_s2 + $0x50] sm:$0xff]  ;;  %v472_v23 = vld [vmem:[%s1470_s2 + $0x28] sm:$0xff]  ;;  %v131_v57 = vsub.s32 4, %v126_v48  ;;  %v387_v59 = vsub.s32 2, %v126_v48  ;;  %v391_v60 = vsub.s32 6, %v126_v48 }
  0x12   :  { %v36_v24 = vld [vmem:[%s1469_s1 + $0x40] sm:$0xff]  ;;  %v482_v26 = vld [vmem:[%s1470_s2 + $0x78] sm:$0xff]  ;;  %v636_v27 = vld [vmem:[%s1472_s4 + $0x8] sm:$0xff] }
  0x13   :  { %204 = vperm.xlu0 %984, %v35_v8   ;;  %v479_v25 = vld [vmem:[%s1470_s2 + $0x60] sm:$0xff]  ;;  %v638_v28 = vld [vmem:[%s1472_s4 + $0x18] sm:$0xff]  ;;  %v640_v30 = vld [vmem:[%s1472_s4 + $0x28] sm:$0xff] }
  0x14   :  { %979 = vset.pattern.permute.xlu1 %v1027_v2  ;;  %v474_v29 = vld [vmem:[%s1470_s2 + $0x38] sm:$0xff]  ;;  %v38_v31 = vld [vmem:[%s1469_s1 + $0x50] sm:$0xff]  ;;  %v476_v33 = vld [vmem:[%s1470_s2 + $0x48] sm:$0xff] }
  0x15   :  { %184 = vperm.xlu1 %979, %v30_v3   ;;  %v642_v32 = vld [vmem:[%s1472_s4 + $0x38] sm:$0xff]  ;;  %v40_v36 = vld [vmem:[%s1469_s1 + $0x60] sm:$0xff]  ;;  %v42_v51 = vld [vmem:[%s1469_s1 + $0x70] sm:$0xff] }
  0x16   :  { %v478_v47 = vld [vmem:[%s1470_s2 + $0x58] sm:$0xff]  ;;  %v27_v54 = vld [vmem:[%s1468_s0] sm:$0x77] }
  0x17   :  { %212 = vperm.xlu0 %984, %v1098_v9   ;;  %v242_v61 = vrot.slane %v27_v54, %v241_v52  ;;  %v246_v62 = vrot.slane %v27_v54, %v245_v53  ;;  %v128_v63 = vrot.slane %v27_v54, %v127_v56 }
  0x19   :  { %188 = vperm.xlu1 %979, %v31_v10  }
  0x1b   :  { %220 = vperm.xlu0 %984, %v1107_v11  }
  0x1d   :  { %980 = vset.pattern.permute.xlu1 %v1026_v1 }
  0x1e   :  { %334 = vperm.xlu1 %980, %v31_v10  }
  0x1f   :  { %228 = vperm.xlu0 %984, %v1113_v12  }
  0x22   :  { %981 = vset.pattern.permute.xlu1 %v1028_v7 }
  0x23   :  { %236 = vperm.xlu0 %984, %v1120_v13   ;;  %485 = vperm.xlu1 %981, %v467_v14  }
  0x27   :  { %999 = vset.pattern.permute.xlu0 %v1028_v7  ;;  %66 = vperm.xlu1 %981, %v32_v6  }
  0x28   :  { %46 = vperm.xlu0 %999, %v28_v0   ;;  %v132_v0 = vrot.slane %v27_v54, %v131_v57 }
  0x2b   :  { %71 = vperm.xlu1 %981, %v33_v5  }
  0x2c   :  { %51 = vperm.xlu0 %999, %v29_v4  }
  0x2f   :  { %982 = vset.pattern.permute.xlu1 %v1027_v2 }
  0x30   :  { %61 = vperm.xlu0 %999, %v31_v10   ;;  %196 = vperm.xlu1 %982, %v33_v5   ;;  %v388_v5 = vrot.slane %v27_v54, %v387_v59  ;;  %v1252_v10 = vrot.slane %v128_v63, %v127_v56 }
  0x32   :  { %v1258_v14 = vrot.slane %v388_v5, %v387_v59 }
  0x34   :  { %490 = vperm.xlu0 %999, %v468_v15   ;;  %983 = vset.pattern.permute.xlu1 %v1026_v1 }
  0x35   :  { %338 = vperm.xlu1 %983, %v32_v6   ;;  %v392_v6 = vrot.slane %v27_v54, %v391_v60 }
  0x37   :  { %v1260_v15 = vrot.slane %v392_v6, %v387_v59 }
  0x38   :  { %76 = vperm.xlu0 %999, %v34_v16  }
  0x39   :  { %985 = vset.pattern.permute.xlu1 %v1028_v7 }
  0x3a   :  { %495 = vperm.xlu1 %985, %v469_v17  }
  0x3c   :  { %505 = vperm.xlu0 %999, %v471_v18  }
  0x3e   :  { %500 = vperm.xlu1 %985, %v470_v19  }
  0x40   :  { %91 = vperm.xlu0 %999, %v1098_v9  }
  0x42   :  { %81 = vperm.xlu1 %985, %v35_v8  }
  0x44   :  { %515 = vperm.xlu0 %999, %v473_v20  }
  0x46   :  { %986 = vset.pattern.permute.xlu1 %v1027_v2 }
  0x47   :  { %200 = vperm.xlu1 %986, %v34_v16  }
  0x48   :  { %101 = vperm.xlu0 %999, %v1107_v11  }
  0x4b   :  { %987 = vset.pattern.permute.xlu1 %v1026_v1 }
  0x4c   :  { %346 = vperm.xlu1 %987, %v34_v16   ;;  %525 = vperm.xlu0 %999, %v475_v21  }
  0x50   :  { %350 = vperm.xlu1 %987, %v35_v8   ;;  %111 = vperm.xlu0 %999, %v1113_v12   ;;  %v1248_v8 = vrot.slane %v242_v61, %v241_v52 }
  0x54   :  { %988 = vset.pattern.permute.xlu1 %v1028_v7  ;;  %535 = vperm.xlu0 %999, %v477_v22  }
  0x55   :  { %510 = vperm.xlu1 %988, %v472_v23  }
  0x58   :  { %121 = vperm.xlu0 %999, %v1120_v13  }
  0x59   :  { %86 = vperm.xlu1 %988, %v36_v24  }
  0x5c   :  { %545 = vperm.xlu0 %999, %v479_v25  }
  0x5d   :  { %989 = vset.pattern.permute.xlu1 %v1027_v2 }
  0x5e   :  { %208 = vperm.xlu1 %989, %v36_v24  }
  0x60   :  { %560 = vperm.xlu0 %999, %v482_v26  }
  0x62   :  { %990 = vset.pattern.permute.xlu1 %v1026_v1 }
  0x63   :  { %354 = vperm.xlu1 %990, %v36_v24  }
  0x64   :  { %650 = vperm.xlu0 %999, %v636_v27  }
  0x67   :  { %358 = vperm.xlu1 %990, %v1098_v9   ;;  %v1250_v9 = vrot.slane %v246_v62, %v241_v52 }
  0x68   :  { %660 = vperm.xlu0 %999, %v638_v28  }
  0x6b   :  { %991 = vset.pattern.permute.xlu1 %v1028_v7 }
  0x6c   :  { %520 = vperm.xlu1 %991, %v474_v29   ;;  %670 = vperm.xlu0 %999, %v640_v30  }
  0x70   :  { %96 = vperm.xlu1 %991, %v38_v31   ;;  %680 = vperm.xlu0 %999, %v642_v32   ;;  %v480_v32 = vld [vmem:[%s1470_s2 + $0x68] sm:$0xff] }
  0x74   :  { %992 = vset.pattern.permute.xlu1 %v1027_v2 }
  0x75   :  { %216 = vperm.xlu1 %992, %v38_v31  }
  0x79   :  { %993 = vset.pattern.permute.xlu1 %v1026_v1 }
  0x7a   :  { %362 = vperm.xlu1 %993, %v38_v31  }
  0x7e   :  { %366 = vperm.xlu1 %993, %v1107_v11   ;;  %v1254_v11 = vrot.slane %v132_v0, %v127_v56 }
  0x81   :  { %v177_v34 = vpop.permute.xlu1 %176  ;;  %v323_v35 = vpop.permute.xlu0 %322 }
  0x82   :  { %994 = vset.pattern.permute.xlu1 %v1028_v7  ;;  %v257_v16 = vmul.f32 %v1248_v8, %v177_v34  ;;  %v258_v17 = vmul.f32 %v1250_v9, %v177_v34  ;;  %v403_v20 = vmul.f32 %v1258_v14, %v323_v35  ;;  %v404_v21 = vmul.f32 %v1260_v15, %v323_v35 }
  0x83   :  { %530 = vperm.xlu1 %994, %v476_v33  }
  0x85   :  { %v1206_v37 = vpop.permute.xlu1 %180  ;;  %v1208_v38 = vpop.permute.xlu0 %330 }
  0x86   :  { %v260_v26 = vmul.f32 %v1250_v9, %v1206_v37 }
  0x87   :  { %106 = vperm.xlu1 %994, %v40_v36  }
  0x89   :  { %v1210_v39 = vpop.permute.xlu0 %342 }
  0x8a   :  { %v1212_v40 = vpop.permute.xlu1 %326 }
  0x8b   :  { %995 = vset.pattern.permute.xlu1 %v1027_v2 }
  0x8c   :  { %224 = vperm.xlu1 %995, %v40_v36  }
  0x8e   :  { %v1215_v41 = vpop.permute.xlu0 %192 }
  0x8f   :  { %v1217_v42 = vpop.permute.xlu1 %56 }
  0x90   :  { %996 = vset.pattern.permute.xlu1 %v1026_v1  ;;  %v147_v54 = vmul.f32 %v1252_v10, %v1217_v42 }
  0x91   :  { %370 = vperm.xlu1 %996, %v40_v36   ;;  %v405_v36 = vmul.f32 %v1258_v14, %v1212_v40 }
  0x92   :  { %v1220_v43 = vpop.permute.xlu0 %204 }
  0x94   :  { %v1222_v45 = vpop.permute.xlu1 %184 }
  0x95   :  { %374 = vperm.xlu1 %996, %v1113_v12   ;;  %v262_v44 = vmul.f32 %v1250_v9, %v1222_v45 }
  0x96   :  { %v1225_v46 = vpop.permute.xlu0 %212 }
  0x98   :  { %v1230_v49 = vpop.permute.xlu1 %188 }
  0x99   :  { %997 = vset.pattern.permute.xlu1 %v1028_v7 }
  0x9a   :  { %540 = vperm.xlu1 %997, %v478_v47   ;;  %v1233_v50 = vpop.permute.xlu0 %220 }
  0x9d   :  { %v1241_v55 = vpop.permute.xlu1 %334 }
  0x9e   :  { %116 = vperm.xlu1 %997, %v42_v51   ;;  %v1243_v58 = vpop.permute.xlu0 %228 }
  0xa2   :  { %998 = vset.pattern.permute.xlu1 %v1027_v2  ;;  %v486_v3 = vpop.permute.xlu1 %485  ;;  %v1246_v4 = vpop.permute.xlu0 %236 }
  0xa3   :  { %232 = vperm.xlu1 %998, %v42_v51  }
  0xa6   :  { %v1256_v12 = vpop.permute.xlu1 %66 }
  0xa7   :  { %v47_v2 = vpop.permute.xlu0 %46  ;;  %1000 = vset.pattern.permute.xlu1 %v1026_v1  ;;  %v259_v1 = vmul.f32 %v1248_v8, %v1206_v37  ;;  %v406_v37 = vmul.f32 %v1260_v15, %v1212_v40  ;;  %v407_v40 = vmul.f32 %v1258_v14, %v1208_v38 }
  0xa8   :  { %v143_v18 = vmul.f32 %v1252_v10, %v47_v2  ;;  %v144_v19 = vmul.f32 %v1254_v11, %v47_v2  ;;  %378 = vperm.xlu1 %1000, %v42_v51   ;;  %v481_v51 = vld [vmem:[%s1470_s2 + $0x70] sm:$0xff]  ;;  %s912_s2 = sshll.u32 %s1030_s26, 4  ;;  %s913_s2 = int_to_ptr.vmem [resolvable:$true] %s912_s2 }
  0xa9   :  { %s1002_s27 = scalar_lea.vmem %s913_s2, 64  ;;  %p1007_p1 = scmp.lt.s32.totalorder %s913_s2, %s913_s2 }
  0xaa   :  { %v289_v22 = vadd.f32 %v257_v16, %v143_v18  ;;  %v290_v23 = vadd.f32 %v258_v17, %v144_v19  ;;  %v1269_v24 = vpop.permute.xlu1 %71  ;;  %p1003_p0 = scmp.ne.s32.totalorder %s913_s2, %s1002_s27  ;;  %p1008_p2 = scmp.lt.s32.totalorder %s1002_s27, %s1002_s27 }
  0xab   :  { %v52_v25 = vpop.permute.xlu0 %51 }
  0xac   :  { %v145_v27 = vmul.f32 %v1252_v10, %v52_v25  ;;  %v146_v28 = vmul.f32 %v1254_v11, %v52_v25  ;;  %382 = vperm.xlu1 %1000, %v1120_v13   ;;  %v435_v29 = vadd.f32 %v403_v20, %v289_v22  ;;  %v436_v33 = vadd.f32 %v404_v21, %v290_v23  ;;  %p1009_p3 = por %p1008_p2, %p1007_p1 }
  0xad   :  { %v261_v13 = vmul.f32 %v1248_v8, %v1222_v45  ;;  %v148_v45 = vmul.f32 %v1254_v11, %v1217_v42  ;;  %v635_v42 = vld [vmem:[%s1472_s4] sm:$0xff]  ;;  %v409_v22 = vmul.f32 %v1258_v14, %v1241_v55 }
  0xae   :  { %v291_v30 = vadd.f32 %v259_v1, %v145_v27  ;;  %v292_v31 = vadd.f32 %v260_v26, %v146_v28  ;;  %v564_v52 = vadd.f32 %v486_v3, %v436_v33  ;;  %v563_v53 = vadd.f32 %v486_v3, %v435_v29  ;;  %v637_v1 = vld [vmem:[%s1472_s4 + $0x10] sm:$0xff]  ;;  %p1010_p4 = pnand %p1009_p3, %p1003_p0 }
  0xaf   :  { %v62_v34 = vpop.permute.xlu0 %61  ;;  %v1281_v35 = vpop.permute.xlu1 %196  ;;  %v293_v63 = vadd.f32 %v261_v13, %v147_v54  ;;  %v294_v0 = vadd.f32 %v262_v44, %v148_v45  ;;  %v263_v3 = vmul.f32 %v1248_v8, %v1230_v49  ;;  %v1029_v33 = vmov 0.0  }
  0xb0   :  { %1001 = vset.pattern.permute.xlu1 %v1028_v7  ;;  %v437_v47 = vadd.f32 %v405_v36, %v291_v30  ;;  %v438_v48 = vadd.f32 %v406_v37, %v292_v31  ;;  %v408_v7 = vmul.f32 %v1260_v15, %v1208_v38  ;;  %v149_v57 = vmul.f32 %v1252_v10, %v62_v34 }
  0xb1   :  { %550 = vperm.xlu1 %1001, %v480_v32   ;;  %v150_v59 = vmul.f32 %v1254_v11, %v62_v34  ;;  %v264_v38 = vmul.f32 %v1250_v9, %v1230_v49  ;;  %v596_v6 = vmax.f32 %v564_v52, 0.0  ;;  %v595_v16 = vmax.f32 %v563_v53, 0.0  ;;  %747 = vmatprep.mubr.f32.mxu0 %v1029_v33  ;;  %v813_v53 = vld [vmem:[%s1474_s6] sm:$0x3] }
  0xb2   :  { %v295_v17 = vadd.f32 %v263_v3, %v149_v57  ;;  %v410_v49 = vmul.f32 %v1260_v15, %v1241_v55  ;;  %v439_v23 = vadd.f32 %v407_v40, %v293_v63  ;;  %v440_v25 = vadd.f32 %v408_v7, %v294_v0  ;;  %v639_v55 = vld [vmem:[%s1472_s4 + $0x20] sm:$0xff]  ;;  %887 = vmatprep.mubr.f32.mxu1 %v1029_v33 }
  0xb3   :  { %v491_v56 = vpop.permute.xlu0 %490  ;;  %v296_v18 = vadd.f32 %v264_v38, %v150_v59  ;;  %v265_v40 = vmul.f32 %v1248_v8, %v1215_v41  ;;  %v266_v7 = vmul.f32 %v1250_v9, %v1215_v41  ;;  %v151_v45 = vmul.f32 %v1252_v10, %v1256_v12 }
  0xb4   :  { %v565_v60 = vadd.f32 %v491_v56, %v437_v47  ;;  %v566_v61 = vadd.f32 %v491_v56, %v438_v48  ;;  %v339_v62 = vpop.permute.xlu1 %338  ;;  %v441_v28 = vadd.f32 %v409_v22, %v295_v17  ;;  %v641_v48 = vld [vmem:[%s1472_s4 + $0x30] sm:$0xff]  ;;  %v152_v56 = vmul.f32 %v1254_v11, %v1256_v12 }
  0xb5   :  { %555 = vperm.xlu1 %1001, %v481_v51   ;;  %v442_v29 = vadd.f32 %v410_v49, %v296_v18  ;;  %v267_v57 = vmul.f32 %v1248_v8, %v1281_v35  ;;  %v268_v59 = vmul.f32 %v1250_v9, %v1281_v35  ;;  %v154_v41 = vmul.f32 %v1254_v11, %v1269_v24 }
  0xb6   :  { %v597_v5 = vmax.f32 %v565_v60, 0.0  ;;  %v598_v2 = vmax.f32 %v566_v61, 0.0  ;;  %v153_v61 = vmul.f32 %v1252_v10, %v1269_v24  ;;  %v411_v63 = vmul.f32 %v1258_v14, %v339_v62 }
  0xb7   :  { %v77_v54 = vpop.permute.xlu0 %76  ;;  %v412_v0 = vmul.f32 %v1260_v15, %v339_v62  ;;  %v413_v12 = vmul.f32 %v1258_v14, %v1210_v39  ;;  %v414_v3 = vmul.f32 %v1260_v15, %v1210_v39  ;;  %v297_v38 = vadd.f32 %v265_v40, %v151_v45 }
  0xb8   :  { %v922_v19 = vpack.c.bf16 %v598_v2, %v596_v6  ;;  %v924_v20 = vpack.c.bf16 %v597_v5, %v595_v16  ;;  %v298_v5 = vadd.f32 %v266_v7, %v152_v56  ;;  %v299_v35 = vadd.f32 %v267_v57, %v153_v61 }
  0xb9   :  { %645 = vperm.xlu1 %1001, %v635_v42   ;;  %v496_v21 = vpop.permute.xlu1 %495  ;;  %v300_v42 = vadd.f32 %v268_v59, %v154_v41  ;;  %v443_v16 = vadd.f32 %v411_v63, %v297_v38 }
  0xba   :  { %923 = vmatprep.subr.bf16.mxu0 %v922_v19  ;;  %v567_v26 = vadd.f32 %v496_v21, %v439_v23  ;;  %v568_v27 = vadd.f32 %v496_v21, %v440_v25  ;;  %v444_v17 = vadd.f32 %v412_v0, %v298_v5  ;;  %v445_v19 = vadd.f32 %v413_v12, %v299_v35 }
  0xbb   :  { %925 = vmatpush1.bf16.msra.mxu0 %v924_v20  ;;  %v506_v2 = vpop.permute.xlu0 %505  ;;  %v446_v20 = vadd.f32 %v414_v3, %v300_v42 }
  0xbc   :  { %v599_v34 = vmax.f32 %v567_v26, 0.0  ;;  %v600_v36 = vmax.f32 %v568_v27, 0.0  ;;  %v571_v18 = vadd.f32 %v506_v2, %v443_v16  ;;  %v572_v24 = vadd.f32 %v506_v2, %v444_v17 }
  0xbd   :  { %655 = vperm.xlu1 %1001, %v637_v1   ;;  %v501_v30 = vpop.permute.xlu1 %500 }
  0xbe   :  { %v569_v31 = vadd.f32 %v501_v30, %v441_v28  ;;  %v570_v32 = vadd.f32 %v501_v30, %v442_v29  ;;  %v603_v49 = vmax.f32 %v571_v18, 0.0  ;;  %v604_v23 = vmax.f32 %v572_v24, 0.0 }
  0xbf   :  { %v155_v29 = vmul.f32 %v1252_v10, %v77_v54  ;;  %v156_v30 = vmul.f32 %v1254_v11, %v77_v54  ;;  %v275_v24 = vmul.f32 %v1248_v8, %v1225_v46 }
  0xc0   :  { %v601_v37 = vmax.f32 %v569_v31, 0.0  ;;  %v602_v13 = vmax.f32 %v570_v32, 0.0 }
  0xc1   :  { %665 = vperm.xlu1 %1001, %v639_v55   ;;  %v82_v44 = vpop.permute.xlu1 %81  ;;  %v92_v55 = vpop.permute.xlu0 %91 }
  0xc2   :  { %v926_v47 = vpack.c.bf16 %v602_v13, %v600_v36  ;;  %v928_v51 = vpack.c.bf16 %v601_v37, %v599_v34  ;;  %v271_v13 = vmul.f32 %v1248_v8, %v1220_v43 }
  0xc4   :  { %927 = vmatprep.subr.bf16.mxu0 %v926_v47  ;;  %v272_v47 = vmul.f32 %v1250_v9, %v1220_v43 }
  0xc5   :  { %675 = vperm.xlu1 %1001, %v641_v48   ;;  %929 = vmatpush1.bf16.msra.mxu0 %v928_v51  ;;  %v157_v48 = vmul.f32 %v1252_v10, %v82_v44  ;;  %v158_v51 = vmul.f32 %v1254_v11, %v82_v44  ;;  %v516_v57 = vpop.permute.xlu0 %515 }
  0xc6   :  { %v201_v52 = vpop.permute.xlu1 %200 }
  0xc7   :  { %v269_v31 = vmul.f32 %v1248_v8, %v201_v52  ;;  %v270_v32 = vmul.f32 %v1250_v9, %v201_v52  ;;  %v303_v59 = vadd.f32 %v271_v13, %v157_v48 }
  0xc9   :  { %816 = vperm.xlu1 %1001, %v813_v53   ;;  %v301_v53 = vadd.f32 %v269_v31, %v155_v29  ;;  %v302_v40 = vadd.f32 %v270_v32, %v156_v30 }
  0xcb   :  { %v347_v60 = vpop.permute.xlu1 %346 }
  0xcc   :  { %v415_v34 = vmul.f32 %v1258_v14, %v347_v60  ;;  %v416_v36 = vmul.f32 %v1260_v15, %v347_v60  ;;  %v304_v60 = vadd.f32 %v272_v47, %v158_v51 }
  0xce   :  { %v447_v7 = vadd.f32 %v415_v34, %v301_v53  ;;  %v448_v52 = vadd.f32 %v416_v36, %v302_v40 }
  0xcf   :  { %v351_v6 = vpop.permute.xlu1 %350 }
  0xd0   :  { %v417_v54 = vmul.f32 %v1258_v14, %v351_v6  ;;  %v418_v45 = vmul.f32 %v1260_v15, %v351_v6  ;;  %v575_v61 = vadd.f32 %v516_v57, %v447_v7  ;;  %v576_v41 = vadd.f32 %v516_v57, %v448_v52 }
  0xd2   :  { %v449_v63 = vadd.f32 %v417_v54, %v303_v59  ;;  %v450_v43 = vadd.f32 %v418_v45, %v304_v60  ;;  %v607_v44 = vmax.f32 %v575_v61, 0.0  ;;  %v608_v38 = vmax.f32 %v576_v41, 0.0 }
  0xd4   :  { %v511_v21 = vpop.permute.xlu1 %510 }
  0xd5   :  { %v573_v62 = vadd.f32 %v511_v21, %v445_v19  ;;  %v574_v22 = vadd.f32 %v511_v21, %v446_v20  ;;  %v276_v19 = vmul.f32 %v1250_v9, %v1225_v46  ;;  %v161_v20 = vmul.f32 %v1252_v10, %v92_v55 }
  0xd6   :  { %v162_v21 = vmul.f32 %v1254_v11, %v92_v55 }
  0xd7   :  { %v605_v25 = vmax.f32 %v573_v62, 0.0  ;;  %v606_v1 = vmax.f32 %v574_v22, 0.0 }
  0xd8   :  { %v87_v39 = vpop.permute.xlu1 %86  ;;  %v308_v29 = vadd.f32 %v276_v19, %v162_v21 }
  0xd9   :  { %v930_v26 = vpack.c.bf16 %v606_v1, %v604_v23  ;;  %v932_v27 = vpack.c.bf16 %v605_v25, %v603_v49  ;;  %v159_v62 = vmul.f32 %v1252_v10, %v87_v39  ;;  %v160_v22 = vmul.f32 %v1254_v11, %v87_v39  ;;  %v102_v1 = vpop.permute.xlu0 %101 }
  0xdb   :  { %931 = vmatprep.subr.bf16.mxu0 %v930_v26 }
  0xdc   :  { %933 = vmatpush1.bf16.msra.mxu0 %v932_v27 }
  0xdd   :  { %v209_v28 = vpop.permute.xlu1 %208  ;;  %v526_v34 = vpop.permute.xlu0 %525 }
  0xde   :  { %v273_v17 = vmul.f32 %v1248_v8, %v209_v28  ;;  %v274_v18 = vmul.f32 %v1250_v9, %v209_v28  ;;  %v307_v28 = vadd.f32 %v275_v24, %v161_v20 }
  0xe0   :  { %v305_v26 = vadd.f32 %v273_v17, %v159_v62  ;;  %v306_v27 = vadd.f32 %v274_v18, %v160_v22 }
  0xe2   :  { %v355_v37 = vpop.permute.xlu1 %354 }
  0xe3   :  { %v419_v49 = vmul.f32 %v1258_v14, %v355_v37  ;;  %v420_v23 = vmul.f32 %v1260_v15, %v355_v37 }
  0xe5   :  { %v451_v30 = vadd.f32 %v419_v49, %v305_v26  ;;  %v452_v46 = vadd.f32 %v420_v23, %v306_v27 }
  0xe6   :  { %v359_v56 = vpop.permute.xlu1 %358 }
  0xe7   :  { %v421_v31 = vmul.f32 %v1258_v14, %v359_v56  ;;  %v422_v32 = vmul.f32 %v1260_v15, %v359_v56  ;;  %v579_v36 = vadd.f32 %v526_v34, %v451_v30  ;;  %v580_v39 = vadd.f32 %v526_v34, %v452_v46 }
  0xe9   :  { %v453_v13 = vadd.f32 %v421_v31, %v307_v28  ;;  %v454_v47 = vadd.f32 %v422_v32, %v308_v29  ;;  %v612_v7 = vmax.f32 %v580_v39, 0.0  ;;  %v611_v52 = vmax.f32 %v579_v36, 0.0 }
  0xeb   :  { %v521_v0 = vpop.permute.xlu1 %520 }
  0xec   :  { %v577_v12 = vadd.f32 %v521_v0, %v449_v63  ;;  %v578_v3 = vadd.f32 %v521_v0, %v450_v43 }
  0xee   :  { %v609_v5 = vmax.f32 %v577_v12, 0.0  ;;  %v610_v35 = vmax.f32 %v578_v3, 0.0  ;;  %v279_v12 = vmul.f32 %v1248_v8, %v1233_v50  ;;  %v280_v3 = vmul.f32 %v1250_v9, %v1233_v50 }
  0xef   :  { %v97_v42 = vpop.permute.xlu1 %96 }
  0xf0   :  { %v934_v2 = vpack.c.bf16 %v610_v35, %v608_v38  ;;  %v936_v16 = vpack.c.bf16 %v609_v5, %v607_v44  ;;  %v163_v61 = vmul.f32 %v1252_v10, %v97_v42  ;;  %v164_v41 = vmul.f32 %v1254_v11, %v97_v42  ;;  %v112_v44 = vpop.permute.xlu0 %111 }
  0xf1   :  { %v165_v38 = vmul.f32 %v1252_v10, %v102_v1  ;;  %v166_v5 = vmul.f32 %v1254_v11, %v102_v1 }
  0xf2   :  { %935 = vmatprep.subr.bf16.mxu0 %v934_v2 }
  0xf3   :  { %937 = vmatpush1.bf16.msra.mxu0 %v936_v16  ;;  %v311_v24 = vadd.f32 %v279_v12, %v165_v38  ;;  %v312_v19 = vadd.f32 %v280_v3, %v166_v5 }
  0xf4   :  { %v217_v6 = vpop.permute.xlu1 %216  ;;  %v536_v20 = vpop.permute.xlu0 %535 }
  0xf5   :  { %v277_v56 = vmul.f32 %v1248_v8, %v217_v6  ;;  %v278_v60 = vmul.f32 %v1250_v9, %v217_v6 }
  0xf7   :  { %v309_v35 = vadd.f32 %v277_v56, %v163_v61  ;;  %v310_v2 = vadd.f32 %v278_v60, %v164_v41 }
  0xf9   :  { %v363_v25 = vpop.permute.xlu1 %362 }
  0xfa   :  { %v423_v63 = vmul.f32 %v1258_v14, %v363_v25  ;;  %v424_v43 = vmul.f32 %v1260_v15, %v363_v25 }
  0xfc   :  { %v455_v16 = vadd.f32 %v423_v63, %v309_v35  ;;  %v456_v42 = vadd.f32 %v424_v43, %v310_v2 }
  0xfd   :  { %v367_v55 = vpop.permute.xlu1 %366 }
  0xfe   :  { %v425_v6 = vmul.f32 %v1258_v14, %v367_v55  ;;  %v426_v17 = vmul.f32 %v1260_v15, %v367_v55  ;;  %v583_v21 = vadd.f32 %v536_v20, %v455_v16  ;;  %v584_v62 = vadd.f32 %v536_v20, %v456_v42 }
 0x100   :  { %v457_v50 = vadd.f32 %v425_v6, %v311_v24  ;;  %v458_v22 = vadd.f32 %v426_v17, %v312_v19  ;;  %v616_v27 = vmax.f32 %v584_v62, 0.0  ;;  %v615_v28 = vmax.f32 %v583_v21, 0.0 }
 0x102   :  { %v531_v48 = vpop.permute.xlu1 %530 }
 0x103   :  { %v581_v37 = vadd.f32 %v531_v48, %v453_v13  ;;  %v582_v51 = vadd.f32 %v531_v48, %v454_v47  ;;  %v283_v47 = vmul.f32 %v1248_v8, %v1243_v58  ;;  %v284_v48 = vmul.f32 %v1250_v9, %v1243_v58 }
 0x105   :  { %v613_v53 = vmax.f32 %v581_v37, 0.0  ;;  %v614_v40 = vmax.f32 %v582_v51, 0.0  ;;  %v122_v37 = vpop.permute.xlu0 %121  ;;  %v169_v51 = vmul.f32 %v1252_v10, %v112_v44 }
 0x106   :  { %v107_v54 = vpop.permute.xlu1 %106 }
 0x107   :  { %v938_v45 = vpack.c.bf16 %v614_v40, %v612_v7  ;;  %v940_v57 = vpack.c.bf16 %v613_v53, %v611_v52  ;;  %v167_v34 = vmul.f32 %v1252_v10, %v107_v54  ;;  %v168_v36 = vmul.f32 %v1254_v11, %v107_v54 }
 0x108   :  { %v170_v53 = vmul.f32 %v1254_v11, %v112_v44  ;;  %v287_v54 = vmul.f32 %v1248_v8, %v1246_v4  ;;  %v315_v60 = vadd.f32 %v283_v47, %v169_v51  ;;  %v629_v47 = vld [vmem:[%s1471_s3 + $0x10] sm:$0xff]  ;;  %v632_v51 = vld [vmem:[%s1471_s3 + $0x28] sm:$0xff] }
 0x109   :  { %939 = vmatprep.subr.bf16.mxu0 %v938_v45  ;;  %v288_v45 = vmul.f32 %v1250_v9, %v1246_v4 }
 0x10a   :  { %941 = vmatpush1.bf16.msra.mxu0 %v940_v57  ;;  %v173_v57 = vmul.f32 %v1252_v10, %v122_v37  ;;  %v316_v61 = vadd.f32 %v284_v48, %v170_v53  ;;  %v630_v48 = vld [vmem:[%s1471_s3 + $0x18] sm:$0xff]  ;;  %v633_v53 = vld [vmem:[%s1471_s3 + $0x30] sm:$0xff] }
 0x10b   :  { %v225_v59 = vpop.permute.xlu1 %224 }
 0x10c   :  { %v281_v32 = vmul.f32 %v1248_v8, %v225_v59  ;;  %v282_v55 = vmul.f32 %v1250_v9, %v225_v59  ;;  %v174_v59 = vmul.f32 %v1254_v11, %v122_v37  ;;  %v319_v38 = vadd.f32 %v287_v54, %v173_v57  ;;  %v631_v37 = vld [vmem:[%s1471_s3 + $0x20] sm:$0xff] }
 0x10e   :  { %v313_v40 = vadd.f32 %v281_v32, %v167_v34  ;;  %v314_v7 = vadd.f32 %v282_v55, %v168_v36  ;;  %v320_v5 = vadd.f32 %v288_v45, %v174_v59 }
 0x110   :  { %v371_v0 = vpop.permute.xlu1 %370 }
 0x111   :  { %v427_v39 = vmul.f32 %v1258_v14, %v371_v0  ;;  %v428_v13 = vmul.f32 %v1260_v15, %v371_v0  ;;  %v546_v0 = vpop.permute.xlu0 %545 }
 0x113   :  { %v459_v56 = vadd.f32 %v427_v39, %v313_v40  ;;  %v460_v58 = vadd.f32 %v428_v13, %v314_v7  ;;  %v627_v39 = vld [vmem:[%s1471_s3] sm:$0xff]  ;;  %v628_v13 = vld [vmem:[%s1471_s3 + $0x8] sm:$0xff]  ;;  %v634_v40 = vld [vmem:[%s1471_s3 + $0x38] sm:$0xff] }
 0x114   :  { %v375_v18 = vpop.permute.xlu1 %374 }
 0x115   :  { %v429_v41 = vmul.f32 %v1258_v14, %v375_v18  ;;  %v430_v63 = vmul.f32 %v1260_v15, %v375_v18  ;;  %v587_v35 = vadd.f32 %v546_v0, %v459_v56  ;;  %v588_v2 = vadd.f32 %v546_v0, %v460_v58 }
 0x117   :  { %v461_v24 = vadd.f32 %v429_v41, %v315_v60 }
 0x119   :  { %v541_v49 = vpop.permute.xlu1 %540 }
 0x11a   :  { %v585_v23 = vadd.f32 %v541_v49, %v457_v50  ;;  %v586_v25 = vadd.f32 %v541_v49, %v458_v22  ;;  %v561_v22 = vpop.permute.xlu0 %560 }
 0x11c   :  { %v617_v1 = vmax.f32 %v585_v23, 0.0  ;;  %v618_v26 = vmax.f32 %v586_v25, 0.0  ;;  %v620_v25 = vmax.f32 %v588_v2, 0.0 }
 0x11d   :  { %v117_v29 = vpop.permute.xlu1 %116 }
 0x11e   :  { %v942_v30 = vpack.c.bf16 %v618_v26, %v616_v27  ;;  %v944_v46 = vpack.c.bf16 %v617_v1, %v615_v28  ;;  %v171_v16 = vmul.f32 %v1252_v10, %v117_v29  ;;  %v172_v42 = vmul.f32 %v1254_v11, %v117_v29  ;;  %v651_v57 = vpop.permute.xlu0 %650 }
 0x11f   :  { %v619_v10 = vmax.f32 %v587_v35, 0.0 }
 0x120   :  { %943 = vmatprep.subr.bf16.mxu0 %v942_v30 }
 0x121   :  { %945 = vmatpush1.bf16.msra.mxu0 %v944_v46 }
 0x122   :  { %v233_v31 = vpop.permute.xlu1 %232 }
 0x123   :  { %v285_v12 = vmul.f32 %v1248_v8, %v233_v31  ;;  %v286_v3 = vmul.f32 %v1250_v9, %v233_v31  ;;  %v462_v9 = vadd.f32 %v430_v63, %v316_v61 }
 0x125   :  { %v317_v19 = vadd.f32 %v285_v12, %v171_v16  ;;  %v318_v20 = vadd.f32 %v286_v3, %v172_v42 }
 0x127   :  { %v379_v52 = vpop.permute.xlu1 %378 }
 0x128   :  { %v431_v6 = vmul.f32 %v1258_v14, %v379_v52  ;;  %v432_v17 = vmul.f32 %v1260_v15, %v379_v52 }
 0x12a   :  { %v463_v49 = vadd.f32 %v431_v6, %v317_v19  ;;  %v464_v23 = vadd.f32 %v432_v17, %v318_v20 }
 0x12b   :  { %v383_v43 = vpop.permute.xlu1 %382 }
 0x12c   :  { %v433_v4 = vmul.f32 %v1258_v14, %v383_v43  ;;  %v434_v44 = vmul.f32 %v1260_v15, %v383_v43 }
 0x12e   :  { %v465_v18 = vadd.f32 %v433_v4, %v319_v38  ;;  %v466_v8 = vadd.f32 %v434_v44, %v320_v5  ;;  %v661_v5 = vpop.permute.xlu0 %660 }
 0x130   :  { %v551_v21 = vpop.permute.xlu1 %550  ;;  %v593_v1 = vadd.f32 %v561_v22, %v465_v18  ;;  %v594_v11 = vadd.f32 %v561_v22, %v466_v8 }
 0x131   :  { %v589_v62 = vadd.f32 %v551_v21, %v461_v24  ;;  %v590_v50 = vadd.f32 %v551_v21, %v462_v9 }
 0x132   :  { %v626_v32 = vmax.f32 %v594_v11, 0.0  ;;  %v625_v55 = vmax.f32 %v593_v1, 0.0  ;;  %v671_v22 = vpop.permute.xlu0 %670 }
 0x133   :  { %v621_v26 = vmax.f32 %v589_v62, 0.0  ;;  %v622_v14 = vmax.f32 %v590_v50, 0.0 }
 0x134   :  { %v556_v27 = vpop.permute.xlu1 %555 }
 0x135   :  { %v591_v15 = vadd.f32 %v556_v27, %v463_v49  ;;  %v592_v28 = vadd.f32 %v556_v27, %v464_v23  ;;  %v946_v29 = vpack.c.bf16 %v622_v14, %v620_v25  ;;  %v948_v30 = vpack.c.bf16 %v621_v26, %v619_v10 }
 0x137   :  { %v623_v46 = vmax.f32 %v591_v15, 0.0  ;;  %v624_v31 = vmax.f32 %v592_v28, 0.0  ;;  %947 = vmatprep.subr.bf16.mxu0 %v946_v29 }
 0x138   :  { %949 = vmatpush1.bf16.msra.mxu0 %v948_v30  ;;  %v646_v54 = vpop.permute.xlu1 %645 }
 0x139   :  { %v950_v34 = vpack.c.bf16 %v626_v32, %v624_v31  ;;  %v952_v36 = vpack.c.bf16 %v625_v55, %v623_v46  ;;  %v681_v32 = vpop.permute.xlu0 %680 }
 0x13b   :  { %951 = vmatprep.subr.bf16.mxu0 %v950_v34 }
 0x13c   :  { %953 = vmatpush1.bf16.msra.mxu0 %v952_v36  ;;  %v656_v4 = vpop.permute.xlu1 %655 }
 0x13f   :  { %748 = vmatmul.mubr.f32.vlgmr.msra.gmra.mrb[0].mxu0 %v627_v39 }
 0x140   :  { %753 = vmatprep.mubr.f32.mxu0 %v1029_v33  ;;  %v666_v21 = vpop.permute.xlu1 %665 }
 0x143   :  { %754 = vmatmul.mubr.f32.gmra.mrb[2].mxu0 %v628_v13 }
 0x144   :  { %759 = vmatprep.mubr.f32.mxu0 %v1029_v33  ;;  %v676_v30 = vpop.permute.xlu1 %675 }
 0x147   :  { %760 = vmatmul.mubr.f32.gmra.mrb[4].mxu0 %v629_v47 }
 0x148   :  { %765 = vmatprep.mubr.f32.mxu0 %v1029_v33 }
 0x14b   :  { %766 = vmatmul.mubr.f32.gmra.mrb[6].mxu0 %v630_v48 }
 0x14c   :  { %771 = vmatprep.mubr.f32.mxu0 %v1029_v33 }
 0x14f   :  { %772 = vmatmul.mubr.f32.gmra.mrb[8].mxu0 %v631_v37 }
 0x150   :  { %777 = vmatprep.mubr.f32.mxu0 %v1029_v33 }
 0x153   :  { %778 = vmatmul.mubr.f32.gmra.mrb[10].mxu0 %v632_v51 }
 0x154   :  { %783 = vmatprep.mubr.f32.mxu0 %v1029_v33 }
 0x157   :  { %784 = vmatmul.mubr.f32.gmra.mrb[12].mxu0 %v633_v53 }
 0x158   :  { %789 = vmatprep.mubr.f32.mxu0 %v1029_v33 }
 0x15b   :  { %790 = vmatmul.mubr.f32.gmra.mrb[14].mxu0 %v634_v40 }
 0x212   :  { %v749_v7 = vpop.f32.mrb[0].mxu0 }
 0x213   :  { %v751_v52 = vpop.f32.mrb[1].mxu0  ;;  %v750_v45 = vadd.f32 %v749_v7, %v646_v54  ;;  %v812_v7 = vld [vmem:[%s1473_s5] sm:$0x3] }
 0x214   :  { %v752_v59 = vadd.f32 %v751_v52, %v646_v54  ;;  %v817_v52 = vpop.permute.xlu1 %816 }
 0x215   :  { %v796_v41 = vmax.f32 %v750_v45, 0.0 }
 0x216   :  { %v755_v56 = vpop.f32.mrb[2].mxu0  ;;  %v797_v43 = vmax.f32 %v752_v59, 0.0 }
 0x217   :  { %v756_v58 = vadd.f32 %v755_v56, %v651_v57  ;;  %v757_v60 = vpop.f32.mrb[3].mxu0 }
 0x218   :  { %v758_v61 = vadd.f32 %v757_v60, %v651_v57 }
 0x219   :  { %v798_v63 = vmax.f32 %v756_v58, 0.0 }
 0x21a   :  { %v799_v0 = vmax.f32 %v758_v61, 0.0  ;;  %v761_v33 = vpop.f32.mrb[4].mxu0 }
 0x21b   :  { %v763_v12 = vpop.f32.mrb[5].mxu0  ;;  %v956_v3 = vpack.c.bf16 %v798_v63, %v796_v41  ;;  %v762_v38 = vadd.f32 %v761_v33, %v656_v4 }
 0x21c   :  { %v954_v44 = vpack.c.bf16 %v799_v0, %v797_v43  ;;  %v764_v35 = vadd.f32 %v763_v12, %v656_v4 }
 0x21d   :  { %v800_v17 = vmax.f32 %v762_v38, 0.0 }
 0x21e   :  { %v767_v2 = vpop.f32.mrb[6].mxu0  ;;  %955 = vmatprep.subr.bf16.mxu1 %v954_v44  ;;  %v801_v8 = vmax.f32 %v764_v35, 0.0 }
 0x21f   :  { %v768_v16 = vadd.f32 %v767_v2, %v661_v5  ;;  %v769_v42 = vpop.f32.mrb[7].mxu0  ;;  %957 = vmatpush1.bf16.msra.mxu1 %v956_v3 }
 0x220   :  { %v770_v6 = vadd.f32 %v769_v42, %v661_v5 }
 0x221   :  { %v802_v18 = vmax.f32 %v768_v16, 0.0 }
 0x222   :  { %v803_v24 = vmax.f32 %v770_v6, 0.0  ;;  %v773_v9 = vpop.f32.mrb[8].mxu0 }
 0x223   :  { %v960_v19 = vpack.c.bf16 %v802_v18, %v800_v17  ;;  %v775_v20 = vpop.f32.mrb[9].mxu0  ;;  %v774_v50 = vadd.f32 %v773_v9, %v666_v21 }
 0x224   :  { %v958_v62 = vpack.c.bf16 %v803_v24, %v801_v8  ;;  %v776_v49 = vadd.f32 %v775_v20, %v666_v21 }
 0x225   :  { %v804_v11 = vmax.f32 %v774_v50, 0.0 }
 0x226   :  { %v779_v23 = vpop.f32.mrb[10].mxu0  ;;  %959 = vmatprep.subr.bf16.mxu1 %v958_v62  ;;  %v805_v14 = vmax.f32 %v776_v49, 0.0 }
 0x227   :  { %v780_v25 = vadd.f32 %v779_v23, %v671_v22  ;;  %v781_v10 = vpop.f32.mrb[11].mxu0  ;;  %961 = vmatpush1.bf16.msra.mxu1 %v960_v19 }
 0x228   :  { %v782_v1 = vadd.f32 %v781_v10, %v671_v22 }
 0x229   :  { %v806_v26 = vmax.f32 %v780_v25, 0.0 }
 0x22a   :  { %v807_v27 = vmax.f32 %v782_v1, 0.0  ;;  %v785_v15 = vpop.f32.mrb[12].mxu0 }
 0x22b   :  { %v964_v28 = vpack.c.bf16 %v806_v26, %v804_v11  ;;  %v787_v29 = vpop.f32.mrb[13].mxu0  ;;  %v786_v31 = vadd.f32 %v785_v15, %v676_v30 }
 0x22c   :  { %v962_v46 = vpack.c.bf16 %v807_v27, %v805_v14  ;;  %v788_v55 = vadd.f32 %v787_v29, %v676_v30 }
 0x22d   :  { %v808_v47 = vmax.f32 %v786_v31, 0.0 }
 0x22e   :  { %v791_v34 = vpop.f32.mrb[14].mxu0  ;;  %963 = vmatprep.subr.bf16.mxu1 %v962_v46  ;;  %v809_v37 = vmax.f32 %v788_v55, 0.0 }
 0x22f   :  { %v792_v36 = vadd.f32 %v791_v34, %v681_v32  ;;  %v793_v39 = vpop.f32.mrb[15].mxu0  ;;  %965 = vmatpush1.bf16.msra.mxu1 %v964_v28 }
 0x230   :  { %v794_v13 = vadd.f32 %v793_v39, %v681_v32 }
 0x231   :  { %v810_v48 = vmax.f32 %v792_v36, 0.0 }
 0x232   :  { %v811_v51 = vmax.f32 %v794_v13, 0.0 }
 0x233   :  { %v968_v53 = vpack.c.bf16 %v810_v48, %v808_v47 }
 0x234   :  { %v966_v40 = vpack.c.bf16 %v811_v51, %v809_v37 }
 0x236   :  { %967 = vmatprep.subr.bf16.mxu1 %v966_v40 }
 0x237   :  { %969 = vmatpush1.bf16.msra.mxu1 %v968_v53 }
 0x23a   :  { %920 = vmatmul.mubr.msk.f32.vlgmr.msra.gmra.mrb[0].mxu1 %vm819_vm0, %v812_v7 }
 0x30d   :  { %v889_v54 = vpop.f32.mrb[0].mxu1 }
 0x30e   :  { %v890_v45 = vadd.f32 %v889_v54, %v817_v52  ;;  %v891_v57 = vpop.f32.mrb[1].mxu1 }
 0x30f   :  { %v892_v59 = vadd.f32 %v891_v57, %v817_v52 }
 0x311   :  { %v896_v56 = vcombine.low %v890_v45, %v892_v59 }
 0x313   :  { %921 = vst.sshfl [vmem:[#allocation2] sm:$0x33 pattern:$0x76325410] %v896_v56 }
 0x314   :  { %1013 = shalt.err (!%p1010_p4)
}
 0x315   :  { %s1014_s29 = scalar_lea.hbm %s1475_s7, 64 }
 0x316   :  { %p1015_p5 = scmp.ne.s32.totalorder %s1475_s7, %s1014_s29  ;;  %p1018_p6 = scmp.lt.u32.totalorder %s1014_s29, %s1475_s7 }
 0x318   :  { %p1020_p7 = pnand %p1018_p6, %p1015_p5 }
 0x31a   :  { %1023 = shalt.err (!%p1020_p7)
}
 0x31b   :  { %915 = dma.vmem_to_hbm [thread:$0]  %s913_s2, 64, %s1475_s7, [#allocation3]  }
 0x31c   :  { %1024 = dma.done.wait [#allocation3], 64  }
 0x31d   :  { %1025 = vsyncadd [#allocation3], 4294967232 }
 0x31e   :  { %919 = vsyncpa [#allocation3], 1 }

</bundles_post_ra>
